<compile_context>
chip_gen: v7x
topology: tpu7x:2x2x1
jax: 0.10.0
libtpu: 0.0.40
codegen_flags: <defaults>
</compile_context>

<pallas_src>
import numpy as np
import jax
import jax.numpy as jnp
from jax.experimental import pallas as pl
from jax.experimental.pallas import tpu as pltpu


def compute_success_probs(n_def, s):
    return [s ** i for i in range(n_def + 1)]


def _round_up(x, m):
    return ((x + m - 1) // m) * m


def _secgame_kernel(w_ref, param_ref, out_ref):
    # w_ref:     (10*K, 4)   fused coefficient / column-select table (VMEM resident)
    # param_ref: (4, TB)     batch tile, batch on the lane axis
    # out_ref:   (10*K, TB)  lane-dense output tile
    # out[e*K+k, b] = sum_j W[e*K+k, j] * param[j, b] = C[e, k] * param[sel[e], b]
    out_ref[...] = jnp.dot(w_ref[...], param_ref[...],
                           preferred_element_type=jnp.float32)


class SecurityGameTransformPallas:
    """Pallas-TPU forward of SecurityGameTransform."""

    def __init__(self, n_def, S1, S2=None, tile_b=4096):
        if S2 is None:
            S2 = S1
        self.n_def = n_def
        K = n_def + 1
        self.K = K
        # lane tile must be a multiple of 128
        self.tile_b = _round_up(int(tile_b), 128)

        # Host-side (float64) construction of the probability tables.
        P11 = np.array(compute_success_probs(n_def, S1[0]), dtype=np.float64)
        P12 = np.array(list(reversed(compute_success_probs(n_def, S1[1]))),
                       dtype=np.float64)
        P21 = np.array(compute_success_probs(n_def, S2[0]), dtype=np.float64)
        P22 = np.array(list(reversed(compute_success_probs(n_def, S2[1]))),
                       dtype=np.float64)

        # 10 x K coefficient table (host precomputed) ...
        C = np.stack([
            P11, P12,
            P11 * P21, P11 * P22,
            (1.0 - P11) * P21, (1.0 - P11) * P22,
            P12 * P21, P12 * P22,
            (1.0 - P12) * P21, (1.0 - P12) * P22,
        ], axis=0)                                            # (10, K)
        # ... and the static column-select map e -> param column.
        sel = np.array([0, 1, 2, 3, 2, 3, 2, 3, 2, 3], dtype=np.int64)

        # Fuse coefficient table + select map into one (10*K, 4) matrix.
        W = np.zeros((10, K, 4), dtype=np.float64)
        for e in range(10):
            W[e, :, sel[e]] = C[e]
        self.W = jnp.asarray(W.reshape(10 * K, 4).astype(np.float32))

        # Kept only for the pure-JAX reference check below.
        self.probs = jnp.asarray(
            np.stack([P11, P12, P21, P22], axis=0).astype(np.float32))

    def __call__(self, param):
        B = param.shape[0]
        K = self.K
        param = jnp.asarray(param, dtype=jnp.float32)

        # Batch lives on the lane axis inside the kernel -> lane-dense stores.
        tb = min(self.tile_b, _round_up(B, 128))
        b_pad = _round_up(B, tb)

        param_t = jnp.transpose(param)                        # (4, B)
        if b_pad != B:
            param_t = jnp.pad(param_t, ((0, 0), (0, b_pad - B)))

        out_t = pl.pallas_call(
            _secgame_kernel,
            out_shape=jax.ShapeDtypeStruct((10 * K, b_pad), jnp.float32),
            grid=(b_pad // tb,),
            in_specs=[
                # W: whole array resident in VMEM for the entire call,
                # no per-step re-staging / double buffering.
                pl.BlockSpec(memory_space=pltpu.MemorySpace.VMEM),
                # params: tiled along the (lane) batch axis.
                pl.BlockSpec((4, tb), lambda i: (0, i)),
            ],
            out_specs=pl.BlockSpec((10 * K, tb), lambda i: (0, i)),
            compiler_params=pltpu.CompilerParams(
                dimension_semantics=("parallel",)),
        )(self.W, param_t)                                    # (10*K, b_pad)

        # Layout plumbing back to the module's (B, 10, nDef+1) output.
        out = out_t[:, :B].reshape(10, K, B).transpose(2, 0, 1)
        return out


def _reference(param, probs):
    # Pure-JAX mirror of the PyTorch forward (float32).
    P11 = probs[0][None, :]
    P12 = probs[1][None, :]
    P21 = probs[2][None, :]
    P22 = probs[3][None, :]
    R10 = param[:, 0:1]
    R11 = param[:, 1:2]
    R20 = param[:, 2:3]
    R21 = param[:, 3:4]
    E11 = P11 * R10
    E12 = P12 * R11
    E21 = P21 * R20
    E22 = P22 * R21
    return jnp.stack(
        [E11, E12, P11 * E21, P11 * E22, (1.0 - P11) * E21, (1.0 - P11) * E22,
         P12 * E21, P12 * E22, (1.0 - P12) * E21, (1.0 - P12) * E22],
        axis=1,
    )


if __name__ == "__main__":
    n_def = 7                      # -> K = nDef + 1 = 8
    S1 = (0.9, 0.8)
    S2 = (0.7, 0.6)
    B = 200                        # not a multiple of 128 -> exercises padding path

    key = jax.random.PRNGKey(0)
    param = jax.random.normal(key, (B, 4), dtype=jnp.float32)

    model = SecurityGameTransformPallas(n_def, S1, S2)
    out = jax.block_until_ready(model(param))

    ref = _reference(param, model.probs)
    np.testing.assert_allclose(np.asarray(out), np.asarray(ref),
                               rtol=1e-5, atol=1e-6)
    assert out.shape == (B, 10, n_def + 1)
    print("KERNEL_OK")
</pallas_src>

<mosaic_0001>
module attributes {stable_mosaic.version = 11 : i64} {
  func.func @_secgame_kernel(%arg0: i32, %arg1: memref<80x4xf32, #tpu.memory_space<vmem>>, %arg2: memref<4x256xf32, #tpu.memory_space<vmem>>, %arg3: memref<80x256xf32, #tpu.memory_space<vmem>>) attributes {dimension_semantics = [#tpu.dimension_semantics<parallel>], iteration_bounds = array<i64: 1>, scalar_prefetch = 0 : i64, scratch_operands = 0 : i64, tpu.core_type = #tpu.core_type<tc>, window_params = [{pipeline_mode = #tpu.pipeline_mode<synchronous>, transform_indices = @transform_0, window_bounds = array<i64: 80, 4>}, {transform_indices = @transform_1, window_bounds = array<i64: 4, 256>}, {transform_indices = @transform_2, window_bounds = array<i64: 80, 256>}]} {
    %c0 = arith.constant 0 : index
    %c0_0 = arith.constant 0 : index
    %0 = vector.load %arg1[%c0, %c0_0] : memref<80x4xf32, #tpu.memory_space<vmem>>, vector<80x4xf32>
    %c0_1 = arith.constant 0 : index
    %c0_2 = arith.constant 0 : index
    %1 = vector.load %arg2[%c0_1, %c0_2] : memref<4x256xf32, #tpu.memory_space<vmem>>, vector<4x256xf32>
    %cst = arith.constant dense<0.000000e+00> : vector<80x256xf32>
    %2 = tpu.matmul %0, %1, %cst {dimension_numbers = #tpu.dot_dimension_numbers<[1], [0], [0], [1], [0, 0, 1, 1], [], []>} : vector<80x4xf32>, vector<4x256xf32>, vector<80x256xf32> -> vector<80x256xf32>
    %c0_3 = arith.constant 0 : index
    %c0_4 = arith.constant 0 : index
    %3 = vector.load %arg3[%c0_3, %c0_4] : memref<80x256xf32, #tpu.memory_space<vmem>>, vector<80x256xf32>
    tpu.vector_store %arg3[%c0_3, %c0_4], %2 {strides = array<i32>} : memref<80x256xf32, #tpu.memory_space<vmem>>, vector<80x256xf32>,
    return
  }
  func.func @transform_0(%arg0: i32) -> (i32, i32) {
    %c0_i32 = arith.constant 0 : i32
    %c0_i32_0 = arith.constant 0 : i32
    %c0_i32_1 = arith.constant 0 : i32
    return %c0_i32, %c0_i32_0 : i32, i32
  }
  func.func @transform_1(%arg0: i32) -> (i32, i32) {
    %c0_i32 = arith.constant 0 : i32
    %c0_i32_0 = arith.constant 0 : i32
    return %c0_i32, %arg0 : i32, i32
  }
  func.func @transform_2(%arg0: i32) -> (i32, i32) {
    %c0_i32 = arith.constant 0 : i32
    %c0_i32_0 = arith.constant 0 : i32
    return %c0_i32, %arg0 : i32, i32
  }
}

</mosaic_0001>

<bundles_post_ra>
// kernel: tpu_custom_call.1
= control target key start
LH: loop header
LB: loop body
LE: loop exit
PB: predicated region body
PF: predicated region fallthrough
CT: control target
= control target key end

     0   :  { %vm56_vm0 = vcmask 1043456   ;;  %v265_v2 = vmov 0.0   ;;  %vm25_vm1 = vcmask 31744   ;;  %s339_s0 = inlined_call_operand.vmem [shape: f32[80,4], index: 0, kind: input, shape index: {}]   ;;  %s340_s1 = inlined_call_operand.vmem [shape: f32[4,256], index: 1, kind: input, shape index: {}]   ;;  %s341_s2 = inlined_call_operand.hbm [shape: f32[80,256], index: 2, kind: output, shape index: {}]  }
   0x1   :  { %v22_v0 = vld [vmem:[%s340_s1] sm:$0xff]  ;;  %125 = vmatprep.mubr.f32.mxu0 %v265_v2  ;;  %155 = vmatprep.mubr.f32.mxu1 %v265_v2  ;;  %v17_v4 = vld [vmem:[%s339_s0 + $0x28] sm:$0xff] }
   0x2   :  { %v24_v1 = vcombine.high %v22_v0, %v22_v0  ;;  %v12_v3 = vld [vmem:[%s339_s0] sm:$0xff] }
   0x4   :  { %222 = vmatprep.subr.msk.mxu0 %vm56_vm0, %v24_v1  ;;  %234 = vmatprep.subr.msk.mxu1 %vm56_vm0, %v24_v1 }
   0x5   :  { %7 = vsyncpa [#allocation3], 0  ;;  %223 = vmatpush1.msk.msra.mxu0 %vm56_vm0, %v22_v0  ;;  %235 = vmatpush1.msk.msra.mxu1 %vm56_vm0, %v22_v0  ;;  %v13_v5 = vld [vmem:[%s339_s0 + $0x8] sm:$0xff]  ;;  %v18_v6 = vld [vmem:[%s339_s0 + $0x30] sm:$0xff] }
   0x6   :  { %224 = vmatmul.mubr.msk.f32.vlgmr.msra.gmra.mrb[0].mxu0 %vm25_vm1, %v12_v3  ;;  %229 = vmatmul.mubr.msk.f32.vlgmr.msra.gmra.mrb[0].mxu1 %vm25_vm1, %v17_v4  ;;  %v14_v7 = vld [vmem:[%s339_s0 + $0x10] sm:$0xff]  ;;  %v19_v8 = vld [vmem:[%s339_s0 + $0x38] sm:$0xff]  ;;  %v20_v10 = vld [vmem:[%s339_s0 + $0x40] sm:$0xff] }
   0x7   :  { %131 = vmatprep.mubr.f32.mxu0 %v265_v2  ;;  %161 = vmatprep.mubr.f32.mxu1 %v265_v2  ;;  %v15_v9 = vld [vmem:[%s339_s0 + $0x18] sm:$0xff]  ;;  %v16_v11 = vld [vmem:[%s339_s0 + $0x20] sm:$0xff]  ;;  %v21_v12 = vld [vmem:[%s339_s0 + $0x48] sm:$0xff]  ;;  %s266_s0 = smov [#allocation2]  }
   0x8   :  { %s211_s30 = sshll.u32 %s266_s0, 4  ;;  %s212_s30 = int_to_ptr.vmem [resolvable:$true] %s211_s30 }
   0x9   :  { %s241_s3 = scalar_lea.vmem %s212_s30, 2560  ;;  %p246_p1 = scmp.lt.s32.totalorder %s212_s30, %s212_s30 }
   0xa   :  { %225 = vmatmul.mubr.msk.f32.gmra.mrb[2].mxu0 %vm25_vm1, %v13_v5  ;;  %230 = vmatmul.mubr.msk.f32.gmra.mrb[2].mxu1 %vm25_vm1, %v18_v6  ;;  %p242_p0 = scmp.ne.s32.totalorder %s212_s30, %s241_s3  ;;  %p247_p2 = scmp.lt.s32.totalorder %s241_s3, %s241_s3 }
   0xb   :  { %137 = vmatprep.mubr.f32.mxu0 %v265_v2  ;;  %167 = vmatprep.mubr.f32.mxu1 %v265_v2 }
   0xc   :  { %p248_p3 = por %p247_p2, %p246_p1 }
   0xe   :  { %226 = vmatmul.mubr.msk.f32.gmra.mrb[4].mxu0 %vm25_vm1, %v14_v7  ;;  %231 = vmatmul.mubr.msk.f32.gmra.mrb[4].mxu1 %vm25_vm1, %v19_v8  ;;  %p249_p4 = pnand %p248_p3, %p242_p0 }
   0xf   :  { %143 = vmatprep.mubr.f32.mxu0 %v265_v2  ;;  %173 = vmatprep.mubr.f32.mxu1 %v265_v2 }
  0x12   :  { %227 = vmatmul.mubr.msk.f32.gmra.mrb[6].mxu0 %vm25_vm1, %v15_v9  ;;  %232 = vmatmul.mubr.msk.f32.gmra.mrb[6].mxu1 %vm25_vm1, %v20_v10 }
  0x13   :  { %149 = vmatprep.mubr.f32.mxu0 %v265_v2  ;;  %179 = vmatprep.mubr.f32.mxu1 %v265_v2 }
  0x16   :  { %228 = vmatmul.mubr.msk.f32.gmra.mrb[8].mxu0 %vm25_vm1, %v16_v11  ;;  %233 = vmatmul.mubr.msk.f32.gmra.mrb[8].mxu1 %vm25_vm1, %v21_v12 }
  0xd9   :  { %v127_v13 = vpop.f32.mrb[0].mxu0  ;;  %v157_v14 = vpop.f32.mrb[0].mxu1 }
  0xda   :  { %186 = vst [vmem:[#allocation2] sm:$0xff] %v127_v13  ;;  %196 = vst [vmem:[#allocation2 + $0x50] sm:$0xff] %v157_v14  ;;  %v129_v15 = vpop.f32.mrb[1].mxu0  ;;  %v159_v16 = vpop.f32.mrb[1].mxu1 }
  0xdb   :  { %187 = vst [vmem:[#allocation2 + $0x8] sm:$0xff] %v129_v15  ;;  %197 = vst [vmem:[#allocation2 + $0x58] sm:$0xff] %v159_v16 }
  0xdd   :  { %v133_v17 = vpop.f32.mrb[2].mxu0  ;;  %v163_v18 = vpop.f32.mrb[2].mxu1 }
  0xde   :  { %188 = vst [vmem:[#allocation2 + $0x10] sm:$0xff] %v133_v17  ;;  %198 = vst [vmem:[#allocation2 + $0x60] sm:$0xff] %v163_v18  ;;  %v135_v19 = vpop.f32.mrb[3].mxu0  ;;  %v165_v20 = vpop.f32.mrb[3].mxu1 }
  0xdf   :  { %189 = vst [vmem:[#allocation2 + $0x18] sm:$0xff] %v135_v19  ;;  %199 = vst [vmem:[#allocation2 + $0x68] sm:$0xff] %v165_v20 }
  0xe1   :  { %v139_v21 = vpop.f32.mrb[4].mxu0  ;;  %v169_v22 = vpop.f32.mrb[4].mxu1 }
  0xe2   :  { %190 = vst [vmem:[#allocation2 + $0x20] sm:$0xff] %v139_v21  ;;  %200 = vst [vmem:[#allocation2 + $0x70] sm:$0xff] %v169_v22  ;;  %v141_v23 = vpop.f32.mrb[5].mxu0  ;;  %v171_v24 = vpop.f32.mrb[5].mxu1 }
  0xe3   :  { %191 = vst [vmem:[#allocation2 + $0x28] sm:$0xff] %v141_v23  ;;  %201 = vst [vmem:[#allocation2 + $0x78] sm:$0xff] %v171_v24 }
  0xe5   :  { %v145_v25 = vpop.f32.mrb[6].mxu0  ;;  %v175_v26 = vpop.f32.mrb[6].mxu1 }
  0xe6   :  { %192 = vst [vmem:[#allocation2 + $0x30] sm:$0xff] %v145_v25  ;;  %202 = vst [vmem:[#allocation2 + $0x80] sm:$0xff] %v175_v26  ;;  %v147_v27 = vpop.f32.mrb[7].mxu0  ;;  %v177_v28 = vpop.f32.mrb[7].mxu1 }
  0xe7   :  { %193 = vst [vmem:[#allocation2 + $0x38] sm:$0xff] %v147_v27  ;;  %203 = vst [vmem:[#allocation2 + $0x88] sm:$0xff] %v177_v28 }
  0xe9   :  { %v151_v29 = vpop.f32.mrb[8].mxu0  ;;  %v181_v30 = vpop.f32.mrb[8].mxu1 }
  0xea   :  { %194 = vst [vmem:[#allocation2 + $0x40] sm:$0xff] %v151_v29  ;;  %204 = vst [vmem:[#allocation2 + $0x90] sm:$0xff] %v181_v30  ;;  %v153_v31 = vpop.f32.mrb[9].mxu0  ;;  %v183_v32 = vpop.f32.mrb[9].mxu1 }
  0xeb   :  { %195 = vst [vmem:[#allocation2 + $0x48] sm:$0xff] %v153_v31  ;;  %205 = vst [vmem:[#allocation2 + $0x98] sm:$0xff] %v183_v32 }
  0xec   :  { %252 = shalt.err (!%p249_p4)
}
  0xed   :  { %s253_s6 = scalar_lea.hbm %s341_s2, 2560 }
  0xee   :  { %p254_p5 = scmp.ne.s32.totalorder %s341_s2, %s253_s6  ;;  %p257_p6 = scmp.lt.u32.totalorder %s253_s6, %s341_s2 }
  0xf0   :  { %p259_p7 = pnand %p257_p6, %p254_p5 }
  0xf2   :  { %262 = shalt.err (!%p259_p7)
}
  0xf3   :  { %s267_s11 = smov 256   ;;  %s268_s12 = smov 16  }
  0xf4   :  { %217 = dma.vmem_to_hbm [thread:$0]  %s212_s30, 2560, %s341_s2, [#allocation3], %s267_s11, %s267_s11, %s268_s12  }
  0xf5   :  { %263 = dma.done.wait [#allocation3], 2560  }
  0xf6   :  { %264 = vsyncadd [#allocation3], 4294964736 }
  0xf7   :  { %221 = vsyncpa [#allocation3], 1 }

</bundles_post_ra>
